<compile_context>
chip_gen: v7x
topology: tpu7x:2x2x1
jax: 0.10.0
libtpu: 0.0.40
codegen_flags: <defaults>
</compile_context>

<pallas_src>
import functools

import jax
import jax.numpy as jnp
from jax.experimental import pallas as pl
from jax.experimental.pallas import tpu as pltpu

_LOG_CLAMP = -100.0  # PyTorch nn.BCELoss clamps log terms at -100


def _round_up(x, m):
    return ((x + m - 1) // m) * m


def _puloss_partials_kernel(x_ref, t_ref, m_ref,
                            st_ref, sm_ref, spp_ref, suu_ref, spu_ref,
                            acc_ref):
    """Elementwise-accumulate 5 partial sums over the streaming axis.

    acc_ref holds 5 block-shaped running sums (elementwise adds only):
      [0] target              -> n_positive
      [1] masks               -> n_unlabeled = sum(masks) - n_positive
      [2] positive  * BCE(x,1)
      [3] unlabeled * BCE(x,0)
      [4] positive  * BCE(x,0)
    They are reduced over sublanes and stored once, at the last streaming
    step of each parallel chunk.
    """
    s = pl.program_id(1)

    @pl.when(s == 0)
    def _():
        acc_ref[...] = jnp.zeros_like(acc_ref)

    x = x_ref[...].astype(jnp.float32)
    t = t_ref[...].astype(jnp.float32)
    m = m_ref[...].astype(jnp.float32)

    mask_on = m == 1.0
    positive = jnp.where((t == 1.0) & mask_on, 1.0, 0.0)
    unlabeled = jnp.where((t == 0.0) & mask_on, 1.0, 0.0)

    # BCE(x, 1) = -log(x) ; BCE(x, 0) = -log1p(-x)   (clamped like PyTorch).
    loss_pos = -jnp.maximum(jnp.log(x), _LOG_CLAMP)
    loss_unl = -jnp.maximum(jnp.log1p(-x), _LOG_CLAMP)

    acc_ref[0] += t
    acc_ref[1] += m
    acc_ref[2] += positive * loss_pos
    acc_ref[3] += unlabeled * loss_unl
    acc_ref[4] += positive * loss_unl

    @pl.when(s == pl.num_programs(1) - 1)
    def _():
        st_ref[0] = jnp.sum(acc_ref[0], axis=0, keepdims=True)
        sm_ref[0] = jnp.sum(acc_ref[1], axis=0, keepdims=True)
        spp_ref[0] = jnp.sum(acc_ref[2], axis=0, keepdims=True)
        suu_ref[0] = jnp.sum(acc_ref[3], axis=0, keepdims=True)
        spu_ref[0] = jnp.sum(acc_ref[4], axis=0, keepdims=True)


def _flatten_pad(arr, fill, padded_size, lanes):
    flat = arr.reshape(-1)
    pad = padded_size - flat.shape[0]
    if pad:
        flat = jnp.pad(flat, (0, pad), constant_values=fill)
    return flat.reshape(-1, lanes)


def _puloss_sums(x2d, t2d, m2d, row_tile, n_par, n_steps, lanes,
                 vmem_limit_bytes=None):
    in_spec = pl.BlockSpec((row_tile, lanes),
                           lambda p, s: (p * n_steps + s, 0))
    out_spec = pl.BlockSpec((1, 1, lanes), lambda p, s: (p, 0, 0))
    out_shape = jax.ShapeDtypeStruct((n_par, 1, lanes), jnp.float32)

    partials = pl.pallas_call(
        _puloss_partials_kernel,
        out_shape=(out_shape,) * 5,
        grid_spec=pltpu.PrefetchScalarGridSpec(
            num_scalar_prefetch=0,
            grid=(n_par, n_steps),
            in_specs=[in_spec] * 3,
            out_specs=(out_spec,) * 5,
            scratch_shapes=[pltpu.VMEM((5, row_tile, lanes), jnp.float32)],
        ),
        compiler_params=pltpu.CompilerParams(
            dimension_semantics=("parallel", "arbitrary"),
            vmem_limit_bytes=vmem_limit_bytes),
    )(x2d, t2d, m2d)

    # Tiny (n_par x lanes) cross-lane reduction left to XLA.
    return [p.sum() for p in partials]


def pu_loss(inp, target, masks=None, *, prior, gamma=0.5,
            lanes=512, max_row_tile=256, max_parallel=4,
            vmem_limit_bytes=None):
    """JAX/Pallas equivalent of PULoss.forward. Returns (objective, out)."""
    assert lanes % 128 == 0 and max_row_tile % 8 == 0 and max_parallel >= 1

    if masks is None:
        masks = jnp.ones_like(inp)
    if masks.shape[-1] == 1:
        # TODO(synk): stream the (..., 1) mask column and broadcast in-kernel
        # instead of materializing the D-wide replication in HBM.
        masks = jnp.broadcast_to(masks, masks.shape[:-1] + (target.shape[-1],))

    n = inp.size
    n_rows = pl.cdiv(n, lanes)
    row_tile = min(max_row_tile, _round_up(n_rows, 8))
    n_blocks = pl.cdiv(n_rows, row_tile)
    n_par = min(max_parallel, n_blocks)
    n_blocks = _round_up(n_blocks, n_par)
    n_steps = n_blocks // n_par
    padded = n_blocks * row_tile * lanes

    # Padding with target=0 / masks=0 contributes zero to every sum.
    x2d = _flatten_pad(inp, 0.5, padded, lanes)
    t2d = _flatten_pad(target, 0.0, padded, lanes)
    m2d = _flatten_pad(masks, 0.0, padded, lanes)

    s_t, s_m, s_pp, s_uu, s_pu = _puloss_sums(
        x2d, t2d, m2d, row_tile, n_par, n_steps, lanes,
        vmem_limit_bytes=vmem_limit_bytes)

    n_positive = s_t
    n_unlabeled = s_m - s_t
    positive_risk = prior * s_pp / n_positive
    negative_risk = s_uu / n_unlabeled - prior * s_pu / n_positive

    is_neg = negative_risk < 0.0
    objective = jnp.where(is_neg, positive_risk,
                          positive_risk + negative_risk)
    out = jnp.where(is_neg, -gamma * negative_risk,
                    positive_risk + negative_risk)
    return objective, out


def _reference(inp, target, masks, prior, gamma):
    """Pure-JAX port of the PyTorch forward (for correctness checking)."""
    positive = ((target == 1) & (masks == 1)).astype(jnp.float32)
    unlabeled = ((target == 0) & (masks == 1)).astype(jnp.float32)
    n_pos = target.sum()
    n_unl = masks.sum() - n_pos
    loss_pos = masks * (-jnp.maximum(jnp.log(inp), _LOG_CLAMP))
    loss_unl = masks * (-jnp.maximum(jnp.log1p(-inp), _LOG_CLAMP))
    pr = (prior * positive * loss_pos).sum() / n_pos
    nr = ((unlabeled / n_unl - prior * positive / n_pos) * loss_unl).sum()
    if float(nr) < 0:
        return pr, -gamma * nr
    return pr + nr, pr + nr


if __name__ == "__main__":
    key = jax.random.PRNGKey(0)
    prior, gamma = 0.3, 0.5

    def make_inputs(k, shape, mask_last_one=False, mask_p=0.9):
        k1, k2, k3 = jax.random.split(k, 3)
        inp = jax.nn.sigmoid(jax.random.normal(k1, shape, jnp.float32))
        target = (jax.random.uniform(k2, shape) < prior).astype(jnp.float32)
        mshape = shape[:-1] + (1,) if mask_last_one else shape
        masks = (jax.random.uniform(k3, mshape) < mask_p).astype(jnp.float32)
        return inp, target, masks

    cases = [
        # (shape, masks_have_last_dim_1, pu_loss kwargs)
        ((2, 8, 32), False, {}),                                       # base: batch=2, seq=8, hidden=32
        ((4, 64, 100), False, dict(max_row_tile=8, max_parallel=2)),   # ragged tail + multi-step + parallel
        ((2, 8, 32), True, {}),                                        # masks with last dim == 1
    ]

    keys = jax.random.split(key, len(cases))
    for k, (shape, m1, kw) in zip(keys, cases):
        inp, target, masks = make_inputs(k, shape, m1)
        objective, out = pu_loss(inp, target, masks,
                                 prior=prior, gamma=gamma, **kw)
        jax.block_until_ready((objective, out))

        full_masks = jnp.broadcast_to(masks, shape) if m1 else masks
        ref_obj, ref_out = _reference(inp, target, full_masks, prior, gamma)
        assert jnp.allclose(objective, ref_obj, rtol=1e-4, atol=1e-5), (
            shape, objective, ref_obj)
        assert jnp.allclose(out, ref_out, rtol=1e-4, atol=1e-5), (
            shape, out, ref_out)

    print("KERNEL_OK")
</pallas_src>

<mosaic_0001>
module attributes {stable_mosaic.version = 11 : i64} {
  func.func @_puloss_partials_kernel(%arg0: i32, %arg1: i32, %arg2: memref<8x512xf32, #tpu.memory_space<vmem>>, %arg3: memref<8x512xf32, #tpu.memory_space<vmem>>, %arg4: memref<8x512xf32, #tpu.memory_space<vmem>>, %arg5: memref<1x1x512xf32, #tpu.memory_space<vmem>>, %arg6: memref<1x1x512xf32, #tpu.memory_space<vmem>>, %arg7: memref<1x1x512xf32, #tpu.memory_space<vmem>>, %arg8: memref<1x1x512xf32, #tpu.memory_space<vmem>>, %arg9: memref<1x1x512xf32, #tpu.memory_space<vmem>>, %arg10: memref<5x8x512xf32, #tpu.memory_space<vmem>>) attributes {dimension_semantics = [#tpu.dimension_semantics<parallel>, #tpu.dimension_semantics<arbitrary>], iteration_bounds = array<i64: 1, 1>, scalar_prefetch = 0 : i64, scratch_operands = 1 : i64, tpu.core_type = #tpu.core_type<tc>, window_params = [{transform_indices = @transform_0, window_bounds = array<i64: 8, 512>}, {transform_indices = @transform_1, window_bounds = array<i64: 8, 512>}, {transform_indices = @transform_2, window_bounds = array<i64: 8, 512>}, {transform_indices = @transform_3, window_bounds = array<i64: 1, 1, 512>}, {transform_indices = @transform_4, window_bounds = array<i64: 1, 1, 512>}, {transform_indices = @transform_5, window_bounds = array<i64: 1, 1, 512>}, {transform_indices = @transform_6, window_bounds = array<i64: 1, 1, 512>}, {transform_indices = @transform_7, window_bounds = array<i64: 1, 1, 512>}]} {
    %c0_i32 = arith.constant 0 : i32
    %0 = arith.cmpi eq, %arg1, %c0_i32 : i32
    %1 = arith.extui %0 : i1 to i32
    %c0_i32_0 = arith.constant 0 : i32
    %2 = arith.cmpi ne, %1, %c0_i32_0 : i32
    scf.if %2 {
      %cst_45 = arith.constant 0.000000e+00 : f32
      %68 = vector.broadcast %cst_45 : f32 to vector<5x8x512xf32>
      %c0_46 = arith.constant 0 : index
      %c0_47 = arith.constant 0 : index
      %c0_48 = arith.constant 0 : index
      %69 = vector.load %arg10[%c0_46, %c0_47, %c0_48] : memref<5x8x512xf32, #tpu.memory_space<vmem>>, vector<5x8x512xf32>
      tpu.vector_store %arg10[%c0_46, %c0_47, %c0_48], %68 {strides = array<i32>} : memref<5x8x512xf32, #tpu.memory_space<vmem>>, vector<5x8x512xf32>,
    } else {
    }
    %c0 = arith.constant 0 : index
    %c0_1 = arith.constant 0 : index
    %3 = vector.load %arg2[%c0, %c0_1] : memref<8x512xf32, #tpu.memory_space<vmem>>, vector<8x512xf32>
    %c0_2 = arith.constant 0 : index
    %c0_3 = arith.constant 0 : index
    %4 = vector.load %arg3[%c0_2, %c0_3] : memref<8x512xf32, #tpu.memory_space<vmem>>, vector<8x512xf32>
    %c0_4 = arith.constant 0 : index
    %c0_5 = arith.constant 0 : index
    %5 = vector.load %arg4[%c0_4, %c0_5] : memref<8x512xf32, #tpu.memory_space<vmem>>, vector<8x512xf32>
    %cst = arith.constant 1.000000e+00 : f32
    %6 = vector.broadcast %cst : f32 to vector<8x512xf32>
    %7 = arith.cmpf oeq, %5, %6 : vector<8x512xf32>
    %cst_6 = arith.constant 1.000000e+00 : f32
    %8 = vector.broadcast %cst_6 : f32 to vector<8x512xf32>
    %9 = arith.cmpf oeq, %4, %8 : vector<8x512xf32>
    %10 = arith.andi %9, %7 : vector<8x512xi1>
    %cst_7 = arith.constant 1.000000e+00 : f32
    %cst_8 = arith.constant 0.000000e+00 : f32
    %11 = vector.broadcast %cst_7 : f32 to vector<8x512xf32>
    %12 = vector.broadcast %cst_8 : f32 to vector<8x512xf32>
    %13 = arith.select %10, %11, %12 : vector<8x512xi1>, vector<8x512xf32>
    %cst_9 = arith.constant 0.000000e+00 : f32
    %14 = vector.broadcast %cst_9 : f32 to vector<8x512xf32>
    %15 = arith.cmpf oeq, %4, %14 : vector<8x512xf32>
    %16 = arith.andi %15, %7 : vector<8x512xi1>
    %cst_10 = arith.constant 1.000000e+00 : f32
    %cst_11 = arith.constant 0.000000e+00 : f32
    %17 = vector.broadcast %cst_10 : f32 to vector<8x512xf32>
    %18 = vector.broadcast %cst_11 : f32 to vector<8x512xf32>
    %19 = arith.select %16, %17, %18 : vector<8x512xi1>, vector<8x512xf32>
    %20 = math.log %3 : vector<8x512xf32>
    %cst_12 = arith.constant -1.000000e+02 : f32
    %21 = vector.broadcast %cst_12 : f32 to vector<8x512xf32>
    %22 = arith.maximumf %20, %21 : vector<8x512xf32>
    %cst_13 = arith.constant 0.000000e+00 : f32
    %23 = vector.broadcast %cst_13 : f32 to vector<8x512xf32>
    %24 = arith.subf %23, %22 : vector<8x512xf32>
    %cst_14 = arith.constant 0.000000e+00 : f32
    %25 = vector.broadcast %cst_14 : f32 to vector<8x512xf32>
    %26 = arith.subf %25, %3 : vector<8x512xf32>
    %27 = math.log1p %26 : vector<8x512xf32>
    %cst_15 = arith.constant -1.000000e+02 : f32
    %28 = vector.broadcast %cst_15 : f32 to vector<8x512xf32>
    %29 = arith.maximumf %27, %28 : vector<8x512xf32>
    %cst_16 = arith.constant 0.000000e+00 : f32
    %30 = vector.broadcast %cst_16 : f32 to vector<8x512xf32>
    %31 = arith.subf %30, %29 : vector<8x512xf32>
    %c0_17 = arith.constant 0 : index
    %c0_18 = arith.constant 0 : index
    %c0_19 = arith.constant 0 : index
    %32 = vector.load %arg10[%c0_17, %c0_18, %c0_19] : memref<5x8x512xf32, #tpu.memory_space<vmem>>, vector<1x8x512xf32>
    %33 = vector.shape_cast %32 : vector<1x8x512xf32> to vector<8x512xf32>
    %34 = arith.addf %33, %4 : vector<8x512xf32>
    %c0_20 = arith.constant 0 : index
    %c0_21 = arith.constant 0 : index
    %c0_22 = arith.constant 0 : index
    %35 = vector.load %arg10[%c0_20, %c0_21, %c0_22] : memref<5x8x512xf32, #tpu.memory_space<vmem>>, vector<1x8x512xf32>
    %36 = vector.shape_cast %35 : vector<1x8x512xf32> to vector<8x512xf32>
    %37 = vector.shape_cast %34 : vector<8x512xf32> to vector<1x8x512xf32>
    tpu.vector_store %arg10[%c0_20, %c0_21, %c0_22], %37 {strides = array<i32>} : memref<5x8x512xf32, #tpu.memory_space<vmem>>, vector<1x8x512xf32>,
    %c1 = arith.constant 1 : index
    %c0_23 = arith.constant 0 : index
    %c0_24 = arith.constant 0 : index
    %38 = vector.load %arg10[%c1, %c0_23, %c0_24] : memref<5x8x512xf32, #tpu.memory_space<vmem>>, vector<1x8x512xf32>
    %39 = vector.shape_cast %38 : vector<1x8x512xf32> to vector<8x512xf32>
    %40 = arith.addf %39, %5 : vector<8x512xf32>
    %c1_25 = arith.constant 1 : index
    %c0_26 = arith.constant 0 : index
    %c0_27 = arith.constant 0 : index
    %41 = vector.load %arg10[%c1_25, %c0_26, %c0_27] : memref<5x8x512xf32, #tpu.memory_space<vmem>>, vector<1x8x512xf32>
    %42 = vector.shape_cast %41 : vector<1x8x512xf32> to vector<8x512xf32>
    %43 = vector.shape_cast %40 : vector<8x512xf32> to vector<1x8x512xf32>
    tpu.vector_store %arg10[%c1_25, %c0_26, %c0_27], %43 {strides = array<i32>} : memref<5x8x512xf32, #tpu.memory_space<vmem>>, vector<1x8x512xf32>,
    %c2 = arith.constant 2 : index
    %c0_28 = arith.constant 0 : index
    %c0_29 = arith.constant 0 : index
    %44 = vector.load %arg10[%c2, %c0_28, %c0_29] : memref<5x8x512xf32, #tpu.memory_space<vmem>>, vector<1x8x512xf32>
    %45 = vector.shape_cast %44 : vector<1x8x512xf32> to vector<8x512xf32>
    %46 = arith.mulf %13, %24 : vector<8x512xf32>
    %47 = arith.addf %45, %46 : vector<8x512xf32>
    %c2_30 = arith.constant 2 : index
    %c0_31 = arith.constant 0 : index
    %c0_32 = arith.constant 0 : index
    %48 = vector.load %arg10[%c2_30, %c0_31, %c0_32] : memref<5x8x512xf32, #tpu.memory_space<vmem>>, vector<1x8x512xf32>
    %49 = vector.shape_cast %48 : vector<1x8x512xf32> to vector<8x512xf32>
    %50 = vector.shape_cast %47 : vector<8x512xf32> to vector<1x8x512xf32>
    tpu.vector_store %arg10[%c2_30, %c0_31, %c0_32], %50 {strides = array<i32>} : memref<5x8x512xf32, #tpu.memory_space<vmem>>, vector<1x8x512xf32>,
    %c3 = arith.constant 3 : index
    %c0_33 = arith.constant 0 : index
    %c0_34 = arith.constant 0 : index
    %51 = vector.load %arg10[%c3, %c0_33, %c0_34] : memref<5x8x512xf32, #tpu.memory_space<vmem>>, vector<1x8x512xf32>
    %52 = vector.shape_cast %51 : vector<1x8x512xf32> to vector<8x512xf32>
    %53 = arith.mulf %19, %31 : vector<8x512xf32>
    %54 = arith.addf %52, %53 : vector<8x512xf32>
    %c3_35 = arith.constant 3 : index
    %c0_36 = arith.constant 0 : index
    %c0_37 = arith.constant 0 : index
    %55 = vector.load %arg10[%c3_35, %c0_36, %c0_37] : memref<5x8x512xf32, #tpu.memory_space<vmem>>, vector<1x8x512xf32>
    %56 = vector.shape_cast %55 : vector<1x8x512xf32> to vector<8x512xf32>
    %57 = vector.shape_cast %54 : vector<8x512xf32> to vector<1x8x512xf32>
    tpu.vector_store %arg10[%c3_35, %c0_36, %c0_37], %57 {strides = array<i32>} : memref<5x8x512xf32, #tpu.memory_space<vmem>>, vector<1x8x512xf32>,
    %c4 = arith.constant 4 : index
    %c0_38 = arith.constant 0 : index
    %c0_39 = arith.constant 0 : index
    %58 = vector.load %arg10[%c4, %c0_38, %c0_39] : memref<5x8x512xf32, #tpu.memory_space<vmem>>, vector<1x8x512xf32>
    %59 = vector.shape_cast %58 : vector<1x8x512xf32> to vector<8x512xf32>
    %60 = arith.mulf %13, %31 : vector<8x512xf32>
    %61 = arith.addf %59, %60 : vector<8x512xf32>
    %c4_40 = arith.constant 4 : index
    %c0_41 = arith.constant 0 : index
    %c0_42 = arith.constant 0 : index
    %62 = vector.load %arg10[%c4_40, %c0_41, %c0_42] : memref<5x8x512xf32, #tpu.memory_space<vmem>>, vector<1x8x512xf32>
    %63 = vector.shape_cast %62 : vector<1x8x512xf32> to vector<8x512xf32>
    %64 = vector.shape_cast %61 : vector<8x512xf32> to vector<1x8x512xf32>
    tpu.vector_store %arg10[%c4_40, %c0_41, %c0_42], %64 {strides = array<i32>} : memref<5x8x512xf32, #tpu.memory_space<vmem>>, vector<1x8x512xf32>,
    %c0_i32_43 = arith.constant 0 : i32
    %65 = arith.cmpi eq, %arg1, %c0_i32_43 : i32
    %66 = arith.extui %65 : i1 to i32
    %c0_i32_44 = arith.constant 0 : i32
    %67 = arith.cmpi ne, %66, %c0_i32_44 : i32
    scf.if %67 {
      %c0_45 = arith.constant 0 : index
      %c0_46 = arith.constant 0 : index
      %c0_47 = arith.constant 0 : index
      %68 = vector.load %arg10[%c0_45, %c0_46, %c0_47] : memref<5x8x512xf32, #tpu.memory_space<vmem>>, vector<1x8x512xf32>
      %69 = vector.shape_cast %68 : vector<1x8x512xf32> to vector<8x512xf32>
      %cst_48 = arith.constant dense<0.000000e+00> : vector<512xf32>
      %70 = vector.multi_reduction <add>, %69, %cst_48 [0] : vector<8x512xf32> to vector<512xf32>
      %71 = vector.shape_cast %70 : vector<512xf32> to vector<1x512xf32>
      %c0_49 = arith.constant 0 : index
      %c0_50 = arith.constant 0 : index
      %c0_51 = arith.constant 0 : index
      %72 = vector.load %arg5[%c0_49, %c0_50, %c0_51] : memref<1x1x512xf32, #tpu.memory_space<vmem>>, vector<1x1x512xf32>
      %73 = vector.shape_cast %72 : vector<1x1x512xf32> to vector<1x512xf32>
      %74 = vector.shape_cast %71 : vector<1x512xf32> to vector<1x1x512xf32>
      tpu.vector_store %arg5[%c0_49, %c0_50, %c0_51], %74 {strides = array<i32>} : memref<1x1x512xf32, #tpu.memory_space<vmem>>, vector<1x1x512xf32>,
      %c1_52 = arith.constant 1 : index
      %c0_53 = arith.constant 0 : index
      %c0_54 = arith.constant 0 : index
      %75 = vector.load %arg10[%c1_52, %c0_53, %c0_54] : memref<5x8x512xf32, #tpu.memory_space<vmem>>, vector<1x8x512xf32>
      %76 = vector.shape_cast %75 : vector<1x8x512xf32> to vector<8x512xf32>
      %cst_55 = arith.constant dense<0.000000e+00> : vector<512xf32>
      %77 = vector.multi_reduction <add>, %76, %cst_55 [0] : vector<8x512xf32> to vector<512xf32>
      %78 = vector.shape_cast %77 : vector<512xf32> to vector<1x512xf32>
      %c0_56 = arith.constant 0 : index
      %c0_57 = arith.constant 0 : index
      %c0_58 = arith.constant 0 : index
      %79 = vector.load %arg6[%c0_56, %c0_57, %c0_58] : memref<1x1x512xf32, #tpu.memory_space<vmem>>, vector<1x1x512xf32>
      %80 = vector.shape_cast %79 : vector<1x1x512xf32> to vector<1x512xf32>
      %81 = vector.shape_cast %78 : vector<1x512xf32> to vector<1x1x512xf32>
      tpu.vector_store %arg6[%c0_56, %c0_57, %c0_58], %81 {strides = array<i32>} : memref<1x1x512xf32, #tpu.memory_space<vmem>>, vector<1x1x512xf32>,
      %c2_59 = arith.constant 2 : index
      %c0_60 = arith.constant 0 : index
      %c0_61 = arith.constant 0 : index
      %82 = vector.load %arg10[%c2_59, %c0_60, %c0_61] : memref<5x8x512xf32, #tpu.memory_space<vmem>>, vector<1x8x512xf32>
      %83 = vector.shape_cast %82 : vector<1x8x512xf32> to vector<8x512xf32>
      %cst_62 = arith.constant dense<0.000000e+00> : vector<512xf32>
      %84 = vector.multi_reduction <add>, %83, %cst_62 [0] : vector<8x512xf32> to vector<512xf32>
      %85 = vector.shape_cast %84 : vector<512xf32> to vector<1x512xf32>
      %c0_63 = arith.constant 0 : index
      %c0_64 = arith.constant 0 : index
      %c0_65 = arith.constant 0 : index
      %86 = vector.load %arg7[%c0_63, %c0_64, %c0_65] : memref<1x1x512xf32, #tpu.memory_space<vmem>>, vector<1x1x512xf32>
      %87 = vector.shape_cast %86 : vector<1x1x512xf32> to vector<1x512xf32>
      %88 = vector.shape_cast %85 : vector<1x512xf32> to vector<1x1x512xf32>
      tpu.vector_store %arg7[%c0_63, %c0_64, %c0_65], %88 {strides = array<i32>} : memref<1x1x512xf32, #tpu.memory_space<vmem>>, vector<1x1x512xf32>,
      %c3_66 = arith.constant 3 : index
      %c0_67 = arith.constant 0 : index
      %c0_68 = arith.constant 0 : index
      %89 = vector.load %arg10[%c3_66, %c0_67, %c0_68] : memref<5x8x512xf32, #tpu.memory_space<vmem>>, vector<1x8x512xf32>
      %90 = vector.shape_cast %89 : vector<1x8x512xf32> to vector<8x512xf32>
      %cst_69 = arith.constant dense<0.000000e+00> : vector<512xf32>
      %91 = vector.multi_reduction <add>, %90, %cst_69 [0] : vector<8x512xf32> to vector<512xf32>
      %92 = vector.shape_cast %91 : vector<512xf32> to vector<1x512xf32>
      %c0_70 = arith.constant 0 : index
      %c0_71 = arith.constant 0 : index
      %c0_72 = arith.constant 0 : index
      %93 = vector.load %arg8[%c0_70, %c0_71, %c0_72] : memref<1x1x512xf32, #tpu.memory_space<vmem>>, vector<1x1x512xf32>
      %94 = vector.shape_cast %93 : vector<1x1x512xf32> to vector<1x512xf32>
      %95 = vector.shape_cast %92 : vector<1x512xf32> to vector<1x1x512xf32>
      tpu.vector_store %arg8[%c0_70, %c0_71, %c0_72], %95 {strides = array<i32>} : memref<1x1x512xf32, #tpu.memory_space<vmem>>, vector<1x1x512xf32>,
      %c4_73 = arith.constant 4 : index
      %c0_74 = arith.constant 0 : index
      %c0_75 = arith.constant 0 : index
      %96 = vector.load %arg10[%c4_73, %c0_74, %c0_75] : memref<5x8x512xf32, #tpu.memory_space<vmem>>, vector<1x8x512xf32>
      %97 = vector.shape_cast %96 : vector<1x8x512xf32> to vector<8x512xf32>
      %cst_76 = arith.constant dense<0.000000e+00> : vector<512xf32>
      %98 = vector.multi_reduction <add>, %97, %cst_76 [0] : vector<8x512xf32> to vector<512xf32>
      %99 = vector.shape_cast %98 : vector<512xf32> to vector<1x512xf32>
      %c0_77 = arith.constant 0 : index
      %c0_78 = arith.constant 0 : index
      %c0_79 = arith.constant 0 : index
      %100 = vector.load %arg9[%c0_77, %c0_78, %c0_79] : memref<1x1x512xf32, #tpu.memory_space<vmem>>, vector<1x1x512xf32>
      %101 = vector.shape_cast %100 : vector<1x1x512xf32> to vector<1x512xf32>
      %102 = vector.shape_cast %99 : vector<1x512xf32> to vector<1x1x512xf32>
      tpu.vector_store %arg9[%c0_77, %c0_78, %c0_79], %102 {strides = array<i32>} : memref<1x1x512xf32, #tpu.memory_space<vmem>>, vector<1x1x512xf32>,
    } else {
    }
    return
  }
  func.func @transform_0(%arg0: i32, %arg1: i32) -> (i32, i32) {
    %c1_i32 = arith.constant 1 : i32
    %0 = arith.muli %arg0, %c1_i32 : i32
    %1 = arith.addi %0, %arg1 : i32
    %c0_i32 = arith.constant 0 : i32
    %c0_i32_0 = arith.constant 0 : i32
    return %1, %c0_i32 : i32, i32
  }
  func.func @transform_1(%arg0: i32, %arg1: i32) -> (i32, i32) {
    %c1_i32 = arith.constant 1 : i32
    %0 = arith.muli %arg0, %c1_i32 : i32
    %1 = arith.addi %0, %arg1 : i32
    %c0_i32 = arith.constant 0 : i32
    %c0_i32_0 = arith.constant 0 : i32
    return %1, %c0_i32 : i32, i32
  }
  func.func @transform_2(%arg0: i32, %arg1: i32) -> (i32, i32) {
    %c1_i32 = arith.constant 1 : i32
    %0 = arith.muli %arg0, %c1_i32 : i32
    %1 = arith.addi %0, %arg1 : i32
    %c0_i32 = arith.constant 0 : i32
    %c0_i32_0 = arith.constant 0 : i32
    return %1, %c0_i32 : i32, i32
  }
  func.func @transform_3(%arg0: i32, %arg1: i32) -> (i32, i32, i32) {
    %c0_i32 = arith.constant 0 : i32
    %c0_i32_0 = arith.constant 0 : i32
    %c0_i32_1 = arith.constant 0 : i32
    return %arg0, %c0_i32, %c0_i32_0 : i32, i32, i32
  }
  func.func @transform_4(%arg0: i32, %arg1: i32) -> (i32, i32, i32) {
    %c0_i32 = arith.constant 0 : i32
    %c0_i32_0 = arith.constant 0 : i32
    %c0_i32_1 = arith.constant 0 : i32
    return %arg0, %c0_i32, %c0_i32_0 : i32, i32, i32
  }
  func.func @transform_5(%arg0: i32, %arg1: i32) -> (i32, i32, i32) {
    %c0_i32 = arith.constant 0 : i32
    %c0_i32_0 = arith.constant 0 : i32
    %c0_i32_1 = arith.constant 0 : i32
    return %arg0, %c0_i32, %c0_i32_0 : i32, i32, i32
  }
  func.func @transform_6(%arg0: i32, %arg1: i32) -> (i32, i32, i32) {
    %c0_i32 = arith.constant 0 : i32
    %c0_i32_0 = arith.constant 0 : i32
    %c0_i32_1 = arith.constant 0 : i32
    return %arg0, %c0_i32, %c0_i32_0 : i32, i32, i32
  }
  func.func @transform_7(%arg0: i32, %arg1: i32) -> (i32, i32, i32) {
    %c0_i32 = arith.constant 0 : i32
    %c0_i32_0 = arith.constant 0 : i32
    %c0_i32_1 = arith.constant 0 : i32
    return %arg0, %c0_i32, %c0_i32_0 : i32, i32, i32
  }
}

</mosaic_0001>

<bundles_post_ra>
// kernel: tpu_custom_call.1
= control target key start
LH: loop header
LB: loop body
LE: loop exit
PB: predicated region body
PF: predicated region fallthrough
CT: control target
= control target key end

     0   :  { %13 = vsyncpa [#allocation4], 0  ;;  %s1206_s0 = inlined_call_operand.hbm [shape: f32[8,512], index: 0, kind: input, shape index: {}]   ;;  %s1207_s1 = inlined_call_operand.hbm [shape: f32[8,512], index: 1, kind: input, shape index: {}]   ;;  %s1208_s2 = inlined_call_operand.hbm [shape: f32[8,512], index: 2, kind: input, shape index: {}]   ;;  %s1209_s3 = inlined_call_operand.hbm [shape: f32[1,1,512], index: 3, kind: output, shape index: {0}]   ;;  %s1210_s4 = inlined_call_operand.hbm [shape: f32[1,1,512], index: 4, kind: output, shape index: {1}]   ;;  %s1211_s5 = inlined_call_operand.hbm [shape: f32[1,1,512], index: 5, kind: output, shape index: {2}]   ;;  %s1212_s6 = inlined_call_operand.hbm [shape: f32[1,1,512], index: 6, kind: output, shape index: {3}]   ;;  %s1213_s7 = inlined_call_operand.hbm [shape: f32[1,1,512], index: 7, kind: output, shape index: {4}]  }
   0x1   :  { %14 = vsyncpa [#allocation7], 0 }
   0x2   :  { %15 = vsyncpa [#allocation5], 0 }
   0x3   :  { %16 = vsyncpa [#allocation11], 0 }
   0x4   :  { %17 = vsyncpa [#allocation14], 0  ;;  %s855_s24 = smov [#allocation6]   ;;  %s856_s26 = smov [#allocation3]  }
   0x5   :  { %s42_s25 = sshll.u32 %s855_s24, 4  ;;  %s28_s27 = sshll.u32 %s856_s26, 4  ;;  %s43_s25 = int_to_ptr.vmem [resolvable:$true] %s42_s25  ;;  %s29_s27 = int_to_ptr.vmem [resolvable:$true] %s28_s27 }
   0x6   :  { %s669_s30 = scalar_lea.hbm %s1207_s1, 512 }
   0x7   :  { %p670_p0 = scmp.ne.s32.totalorder %s1207_s1, %s669_s30  ;;  %p673_p1 = scmp.lt.u32.totalorder %s669_s30, %s1207_s1 }
   0x9   :  { %p675_p2 = pnand %p673_p1, %p670_p0 }
   0xb   :  { %678 = shalt.err (!%p675_p2)
}
   0xc   :  { %s679_s12 = scalar_lea.vmem %s43_s25, 512  ;;  %p684_p4 = scmp.lt.s32.totalorder %s43_s25, %s43_s25 }
   0xd   :  { %p680_p3 = scmp.ne.s32.totalorder %s43_s25, %s679_s12  ;;  %p685_p5 = scmp.lt.s32.totalorder %s679_s12, %s679_s12 }
   0xf   :  { %p686_p6 = por %p685_p5, %p684_p4 }
  0x11   :  { %p687_p7 = pnand %p686_p6, %p680_p3 }
  0x13   :  { %690 = shalt.err (!%p687_p7)
}
  0x14   :  { %45 = dma.hbm_to_vmem [thread:$0]  %s1207_s1, 512, %s43_s25, [#allocation7]  }
  0x15   :  { %s691_s17 = scalar_lea.hbm %s1206_s0, 512 }
  0x16   :  { %p692_p8 = scmp.ne.s32.totalorder %s1206_s0, %s691_s17  ;;  %p695_p9 = scmp.lt.u32.totalorder %s691_s17, %s1206_s0 }
  0x18   :  { %p697_p10 = pnand %p695_p9, %p692_p8 }
  0x1a   :  { %700 = shalt.err (!%p697_p10)
}
  0x1b   :  { %s701_s22 = scalar_lea.vmem %s29_s27, 512  ;;  %p706_p12 = scmp.lt.s32.totalorder %s29_s27, %s29_s27 }
  0x1c   :  { %p702_p11 = scmp.ne.s32.totalorder %s29_s27, %s701_s22  ;;  %p707_p13 = scmp.lt.s32.totalorder %s701_s22, %s701_s22 }
  0x1e   :  { %p708_p0 = por %p707_p13, %p706_p12 }
  0x20   :  { %p709_p1 = pnand %p708_p0, %p702_p11 }
  0x22   :  { %712 = shalt.err (!%p709_p1)
}
  0x23   :  { %31 = dma.hbm_to_vmem [thread:$0]  %s1206_s0, 512, %s29_s27, [#allocation4]  }
  0x24   :  { %s857_s24 = smov [#allocation8]   ;;  %s713_s29 = scalar_lea.hbm %s1208_s2, 512 }
  0x25   :  { %s56_s25 = sshll.u32 %s857_s24, 4  ;;  %p714_p2 = scmp.ne.s32.totalorder %s1208_s2, %s713_s29  ;;  %s57_s25 = int_to_ptr.vmem [resolvable:$true] %s56_s25 }
  0x26   :  { %p717_p3 = scmp.lt.u32.totalorder %s713_s29, %s1208_s2 }
  0x28   :  { %p719_p4 = pnand %p717_p3, %p714_p2 }
  0x2a   :  { %722 = shalt.err (!%p719_p4)
}
  0x2b   :  { %s723_s11 = scalar_lea.vmem %s57_s25, 512  ;;  %p728_p6 = scmp.lt.s32.totalorder %s57_s25, %s57_s25 }
  0x2c   :  { %p724_p5 = scmp.ne.s32.totalorder %s57_s25, %s723_s11  ;;  %p729_p7 = scmp.lt.s32.totalorder %s723_s11, %s723_s11 }
  0x2e   :  { %p730_p8 = por %p729_p7, %p728_p6 }
  0x30   :  { %p731_p9 = pnand %p730_p8, %p724_p5 }
  0x32   :  { %734 = shalt.err (!%p731_p9)
}
  0x33   :  { %59 = dma.hbm_to_vmem [thread:$0]  %s1208_s2, 512, %s57_s25, [#allocation7]  }
  0x34   :  { %845 = dma.done.wait [#allocation4], 512  }
  0x35   :  { %846 = vsyncadd [#allocation4], 4294966784 }
  0x36   :  { %847 = dma.done.wait [#allocation7], 1024  }
  0x37   :  { %848 = vsyncadd [#allocation7], 4294966272  ;;  %v316_v0 = vlaneseq  ;;  %v858_v1 = vmov 1966171168   ;;  %v941_v5 = vld [vmem:[#allocation8] sm:$0xff]  ;;  %v943_v6 = vld [vmem:[#allocation8 + $0x8] sm:$0xff] }
  0x38   :  { %v314_v2 = vunpack.c.l.s4 %v858_v1  ;;  %v945_v7 = vld [vmem:[#allocation8 + $0x10] sm:$0xff]  ;;  %v947_v8 = vld [vmem:[#allocation8 + $0x18] sm:$0xff]  ;;  %vm108_vm0 = vcmp.eq.f32.partialorder %v941_v5, 1.0  ;;  %vm109_vm1 = vcmp.eq.f32.partialorder %v943_v6, 1.0  ;;  %v345_v10 = vrot.slane %v941_v5, 4  ;;  %v954_v11 = vld [vmem:[#allocation3] sm:$0xff] }
  0x39   :  { %v317_v4 = vshrl.u32 %v316_v0, 7  ;;  %vm110_vm2 = vcmp.eq.f32.partialorder %v945_v7, 1.0  ;;  %v351_v12 = vrot.slane %v943_v6, 4  ;;  %v357_v13 = vrot.slane %v945_v7, 4  ;;  %v960_v15 = vld [vmem:[#allocation3 + $0x8] sm:$0xff]  ;;  %v962_v16 = vld [vmem:[#allocation3 + $0x10] sm:$0xff] }
  0x3a   :  { %v315_v3 = vunpack.c.0.s8 %v314_v2  ;;  %v363_v14 = vrot.slane %v947_v8, 4  ;;  %vm111_vm3 = vcmp.eq.f32.partialorder %v947_v8, 1.0  ;;  %v346_v17 = vadd.f32 %v345_v10, %v941_v5  ;;  %v966_v18 = vld [vmem:[#allocation6] sm:$0xff]  ;;  %v968_v19 = vld [vmem:[#allocation6 + $0x8] sm:$0xff]  ;;  %v975_v25 = vld [vmem:[#allocation6 + $0x10] sm:$0xff]  ;;  %s860_s2 = smov [#allocation10]  }
  0x3b   :  { %v152_v20 = vsub.f32 0.0, %v954_v11  ;;  %v153_v21 = vsub.f32 0.0, %v960_v15  ;;  %v352_v22 = vadd.f32 %v351_v12, %v943_v6  ;;  %v358_v23 = vadd.f32 %v357_v13, %v945_v7  ;;  %v977_v26 = vld [vmem:[#allocation6 + $0x18] sm:$0xff]  ;;  %s589_s12 = sshll.u32 %s860_s2, 4  ;;  %s1046_s12 = int_to_ptr.vmem [resolvable:$true] %s589_s12 }
  0x3c   :  { %v951_v9 = vsub.s32 %v315_v3, %v317_v4  ;;  %v364_v24 = vadd.f32 %v363_v14, %v947_v8  ;;  %vm124_vm4 = vcmp.eq.f32.partialorder %v966_v18, 0.0  ;;  %v347_v27 = vrot.slane %v346_v17, 2  ;;  %v980_v28 = vld [vmem:[#allocation3 + $0x18] sm:$0xff]  ;;  %s735_s13 = scalar_lea.vmem %s1046_s12, 64  ;;  %p740_p11 = scmp.lt.s32.totalorder %s1046_s12, %s1046_s12 }
  0x3d   :  { %vm125_vm5 = vcmp.eq.f32.partialorder %v968_v19, 0.0  ;;  %vm126_vm6 = vcmp.eq.f32.partialorder %v975_v25, 0.0  ;;  %vm128_vm7 = vmand %vm124_vm4, %vm108_vm0  ;;  %v154_v29 = vsub.f32 0.0, %v962_v16  ;;  %v353_v30 = vrot.slane %v352_v22, 2  ;;  %p736_p10 = scmp.ne.s32.totalorder %s1046_s12, %s735_s13  ;;  %p741_p12 = scmp.lt.s32.totalorder %s735_s13, %s735_s13 }
  0x3e   :  { %v359_v31 = vrot.slane %v358_v23, 2  ;;  %v365_v32 = vrot.slane %v364_v24, 2  ;;  %vm127_vm8 = vcmp.eq.f32.partialorder %v977_v26, 0.0  ;;  %vm129_vm9 = vmand %vm125_vm5, %vm109_vm1  ;;  %v348_v33 = vadd.f32 %v347_v27, %v346_v17 }
  0x3f   :  { %vm130_vm10 = vmand %vm126_vm6, %vm110_vm2  ;;  %v859_v34 = vmov 0.0   ;;  %v156_v37 = vadd.f32 1.0, %v152_v20  ;;  %v354_v38 = vadd.f32 %v353_v30, %v352_v22  ;;  %v155_v41 = vsub.f32 0.0, %v980_v28  ;;  %p742_p13 = por %p741_p12, %p740_p11 }
  0x40   :  { %v993_v35 = vsel %vm128_vm7, 1.0, %v859_v34  ;;  %v996_v36 = vsel %vm129_vm9, 1.0, %v859_v34  ;;  %v360_v39 = vadd.f32 %v359_v31, %v358_v23  ;;  %v366_v40 = vadd.f32 %v365_v32, %v364_v24  ;;  %vm1001_vm11 = vmand %vm127_vm8, %vm111_vm3 }
  0x41   :  { %v349_v42 = vrot.slane %v348_v33, 1  ;;  %v1006_v44 = vsel %vm130_vm10, 1.0, %v859_v34  ;;  %653 = vlog2.f32 %v156_v37  ;;  %v159_v45 = vmul.f32 -0.5, %v152_v20  ;;  %p743_p0 = pnand %p742_p13, %p736_p10 }
  0x42   :  { %v355_v46 = vrot.slane %v354_v38, 1  ;;  %v361_v47 = vrot.slane %v360_v39, 1  ;;  %v367_v48 = vrot.slane %v366_v40, 1  ;;  %v162_v49 = vand.u32 2147483647, %v152_v20 }
  0x43   :  { %vm1008_vm12 = vcmp.lt.s32.totalorder %v316_v0, 512  ;;  %v350_v51 = vadd.f32 %v349_v42, %v348_v33  ;;  %v160_v52 = vadd.f32 1.0, %v159_v45  ;;  %v165_v53 = vadd.f32 1.0, %v153_v21 }
  0x44   :  { %v168_v54 = vmul.f32 -0.5, %v153_v21  ;;  %v356_v55 = vadd.f32 %v355_v46, %v354_v38  ;;  %v362_v56 = vadd.f32 %v361_v47, %v360_v39  ;;  %v368_v57 = vadd.f32 %v367_v48, %v366_v40 }
  0x45   :  { %v1015_v58 = vsel %vm1001_vm11, 1.0, %v859_v34  ;;  %vm1017_vm13 = vcmp.lt.f32.partialorder %v162_v49, 0.0004427343  ;;  %655 = vlog2.f32 %v165_v53  ;;  %v171_v61 = vand.u32 2147483647, %v153_v21 }
  0x46   :  { %v169_v60 = vadd.f32 1.0, %v168_v54  ;;  %v373_v62 = vcombine.low %v350_v51, %v356_v55  ;;  %v374_v63 = vcombine.low %v362_v56, %v368_v57  ;;  %v174_v0 = vadd.f32 1.0, %v154_v29 }
  0x47   :  { %v177_v1 = vmul.f32 -0.5, %v154_v29  ;;  %v161_v2 = vmul.f32 %v160_v52, %v152_v20  ;;  %v180_v4 = vand.u32 2147483647, %v154_v29  ;;  %v183_v10 = vadd.f32 1.0, %v155_v41 }
  0x48   :  { %v1021_v3 = vmul.f32 %v169_v60, %v153_v21  ;;  %v381_v12 = vrot.slane %v373_v62, %v951_v9  ;;  %v388_v13 = vrot.slane %v374_v63, %v951_v9  ;;  %657 = vlog2.f32 %v174_v0 }
  0x49   :  { %v178_v14 = vadd.f32 1.0, %v177_v1  ;;  %vm1025_vm14 = vcmp.lt.f32.partialorder %v171_v61, 0.0004427343  ;;  %659 = vlog2.f32 %v183_v10  ;;  %v186_v22 = vmul.f32 -0.5, %v155_v41 }
  0x4a   :  { %v189_v23 = vand.u32 2147483647, %v155_v41  ;;  %v389_v20 = vcombine.low %v381_v12, %v388_v13  ;;  %vm1031_vm15 = vcmp.lt.f32.partialorder %v180_v4, 0.0004427343  ;;  %v283_v27 = vrot.slane %v966_v18, 4 }
  0x4b   :  { %v1029_v21 = vmul.f32 %v178_v14, %v154_v29  ;;  %v289_v30 = vrot.slane %v968_v19, 4  ;;  %v654_v31 = vpop.eup %653  ;;  %v187_v32 = vadd.f32 1.0, %v186_v22  ;;  %v295_v37 = vrot.slane %v975_v25, 4 }
  0x4c   :  { %vm1037_vm4 = vcmp.lt.f32.partialorder %v189_v23, 0.0004427343  ;;  %v301_v38 = vrot.slane %v977_v26, 4  ;;  %v396_v29 = vrot.slane %v389_v20, %v951_v9  ;;  %v158_v39 = vmul.f32 0.6931472, %v654_v31 }
  0x4d   :  { %v284_v40 = vadd.f32 %v283_v27, %v966_v18  ;;  %v290_v42 = vadd.f32 %v289_v30, %v968_v19  ;;  %v188_v43 = vmul.f32 %v187_v32, %v155_v41  ;;  %v296_v45 = vadd.f32 %v295_v37, %v975_v25 }
  0x4e   :  { %v302_v46 = vadd.f32 %v301_v38, %v977_v26  ;;  %vm112_vm5 = vcmp.eq.f32.partialorder %v966_v18, 1.0  ;;  %398 = vst.msk [vmem:[#allocation10] sm:$0xf] %vm1008_vm12, %v396_v29  ;;  %v164_v47 = vsel %vm1017_vm13, %v161_v2, %v158_v39  ;;  %vm113_vm6 = vcmp.eq.f32.partialorder %v968_v19, 1.0 }
  0x4f   :  { %v285_v48 = vrot.slane %v284_v40, 2  ;;  %v291_v49 = vrot.slane %v290_v42, 2  ;;  %vm1058_vm7 = vmand %vm112_vm5, %vm108_vm0  ;;  %v656_v51 = vpop.eup %655  ;;  %v1062_v52 = vmax.f32 %v164_v47, -100.0  ;;  %v297_v18 = vrot.slane %v296_v45, 2 }
  0x50   :  { %v303_v53 = vrot.slane %v302_v46, 2  ;;  %vm114_vm8 = vcmp.eq.f32.partialorder %v975_v25, 1.0  ;;  %vm1067_vm9 = vmand %vm113_vm6, %vm109_vm1 }
  0x51   :  { %746 = shalt.err (!%p743_p0)
}
  0x52   :  { %s747_s16 = scalar_lea.hbm %s1210_s4, 64 }
  0x53   :  { %p748_p1 = scmp.ne.s32.totalorder %s1210_s4, %s747_s16  ;;  %p751_p2 = scmp.lt.u32.totalorder %s747_s16, %s1210_s4 }
  0x55   :  { %p753_p3 = pnand %p751_p2, %p748_p1 }
  0x57   :  { %756 = shalt.err (!%p753_p3)
}
  0x58   :  { %592 = dma.vmem_to_hbm [thread:$0]  %s1046_s12, 64, %s1210_s4, [#allocation11]   ;;  %v167_v5 = vmul.f32 0.6931472, %v656_v51  ;;  %v286_v6 = vadd.f32 %v285_v48, %v284_v40  ;;  %v292_v19 = vadd.f32 %v291_v49, %v290_v42  ;;  %vm115_vm0 = vcmp.eq.f32.partialorder %v977_v26, 1.0  ;;  %v658_v60 = vpop.eup %657  ;;  %vm118_vm1 = vmand %vm114_vm8, %vm110_vm2 }
  0x59   :  { %v196_v55 = vsub.f32 0.0, %v1062_v52  ;;  %v298_v56 = vadd.f32 %v297_v18, %v296_v45  ;;  %v304_v57 = vadd.f32 %v303_v53, %v302_v46  ;;  %v1093_v59 = vsel %vm1058_vm7, 1.0, %v859_v34  ;;  %v660_v1 = vpop.eup %659  ;;  %vm119_vm10 = vmand %vm115_vm0, %vm111_vm3  ;;  %s861_s4 = smov [#allocation9]  }
  0x5a   :  { %v173_v61 = vsel %vm1025_vm14, %v1021_v3, %v167_v5  ;;  %v287_v62 = vrot.slane %v286_v6, 1  ;;  %v293_v63 = vrot.slane %v292_v19, 1  ;;  %v1101_v0 = vsel %vm1067_vm9, 1.0, %v859_v34  ;;  %s579_s1 = sshll.u32 %s861_s4, 4  ;;  %s580_s1 = int_to_ptr.vmem [resolvable:$true] %s579_s1 }
  0x5b   :  { %v176_v2 = vmul.f32 0.6931472, %v658_v60  ;;  %v193_v4 = vmax.f32 %v173_v61, -100.0  ;;  %v247_v10 = vmul.f32 %v196_v55, %v993_v35  ;;  %v299_v12 = vrot.slane %v298_v56, 1  ;;  %s757_s23 = scalar_lea.vmem %s580_s1, 64  ;;  %p762_p5 = scmp.lt.s32.totalorder %s580_s1, %s580_s1 }
  0x5c   :  { %v185_v13 = vmul.f32 0.6931472, %v660_v1  ;;  %v288_v14 = vadd.f32 %v287_v62, %v286_v6  ;;  %v294_v22 = vadd.f32 %v293_v63, %v292_v19  ;;  %v305_v23 = vrot.slane %v304_v57, 1  ;;  %p758_p4 = scmp.ne.s32.totalorder %s580_s1, %s757_s23  ;;  %p763_p6 = scmp.lt.s32.totalorder %s757_s23, %s757_s23 }
  0x5d   :  { %v182_v3 = vsel %vm1031_vm15, %v1029_v21, %v176_v2  ;;  %v197_v17 = vsub.f32 0.0, %v193_v4  ;;  %v461_v20 = vrot.slane %v247_v10, 4  ;;  %v300_v27 = vadd.f32 %v299_v12, %v298_v56 }
  0x5e   :  { %v191_v35 = vsel %vm1037_vm4, %v188_v43, %v185_v13  ;;  %v194_v30 = vmax.f32 %v182_v3, -100.0  ;;  %v306_v7 = vadd.f32 %v305_v23, %v304_v57  ;;  %v311_v31 = vcombine.low %v288_v14, %v294_v22  ;;  %p764_p7 = por %p763_p6, %p762_p5 }
  0x5f   :  { %v195_v25 = vmax.f32 %v191_v35, -100.0  ;;  %v248_v32 = vmul.f32 %v197_v17, %v996_v36  ;;  %v462_v37 = vadd.f32 %v461_v20, %v247_v10  ;;  %v1119_v21 = vsel %vm118_vm1, 1.0, %v859_v34 }
  0x60   :  { %v198_v24 = vsub.f32 0.0, %v194_v30  ;;  %v312_v38 = vcombine.low %v300_v27, %v306_v7  ;;  %v319_v8 = vrot.slane %v311_v31, %v951_v9  ;;  %v1123_v26 = vsel %vm119_vm10, 1.0, %v859_v34  ;;  %p765_p8 = pnand %p764_p7, %p758_p4 }
  0x61   :  { %v199_v29 = vsub.f32 0.0, %v195_v25  ;;  %v463_v33 = vrot.slane %v462_v37, 2  ;;  %v467_v39 = vrot.slane %v248_v32, 4  ;;  %661 = vlog2.f32 %v954_v11 }
  0x62   :  { %v249_v40 = vmul.f32 %v198_v24, %v1006_v44  ;;  %v326_v36 = vrot.slane %v312_v38, %v951_v9  ;;  %663 = vlog2.f32 %v960_v15  ;;  %v264_v42 = vmul.f32 %v196_v55, %v1093_v59 }
  0x63   :  { %v250_v43 = vmul.f32 %v199_v29, %v1015_v58  ;;  %v464_v45 = vadd.f32 %v463_v33, %v462_v37  ;;  %v468_v46 = vadd.f32 %v467_v39, %v248_v32  ;;  %665 = vlog2.f32 %v962_v16 }
  0x64   :  { %v473_v34 = vrot.slane %v249_v40, 4  ;;  %v327_v47 = vcombine.low %v319_v8, %v326_v36  ;;  %667 = vlog2.f32 %v980_v28  ;;  %v265_v11 = vmul.f32 %v197_v17, %v1101_v0 }
  0x65   :  { %v465_v44 = vrot.slane %v464_v45, 1  ;;  %v469_v48 = vrot.slane %v468_v46, 2  ;;  %v479_v49 = vrot.slane %v250_v43, 4  ;;  %v266_v15 = vmul.f32 %v198_v24, %v1119_v21 }
  0x66   :  { %v474_v41 = vadd.f32 %v473_v34, %v249_v40  ;;  %v334_v58 = vrot.slane %v327_v47, %v951_v9  ;;  %v267_v51 = vmul.f32 %v199_v29, %v1123_v26  ;;  %v519_v52 = vrot.slane %v264_v42, 4 }
  0x67   :  { %v470_v16 = vadd.f32 %v469_v48, %v468_v46  ;;  %v480_v18 = vadd.f32 %v479_v49, %v250_v43  ;;  %v525_v53 = vrot.slane %v265_v11, 4  ;;  %v531_v5 = vrot.slane %v266_v15, 4 }
  0x68   :  { %v475_v54 = vrot.slane %v474_v41, 2  ;;  %340 = vst.msk [vmem:[#allocation9] sm:$0xf] %vm1008_vm12, %v334_v58  ;;  %v520_v28 = vadd.f32 %v519_v52, %v264_v42  ;;  %v537_v6 = vrot.slane %v267_v51, 4  ;;  %v466_v19 = vadd.f32 %v465_v44, %v464_v45 }
  0x69   :  { %v471_v55 = vrot.slane %v470_v16, 1  ;;  %v481_v56 = vrot.slane %v480_v18, 2  ;;  %v526_v57 = vadd.f32 %v525_v53, %v265_v11 }
  0x6a   :  { %768 = shalt.err (!%p765_p8)
}
  0x6b   :  { %s769_s26 = scalar_lea.hbm %s1209_s3, 64 }
  0x6c   :  { %p770_p9 = scmp.ne.s32.totalorder %s1209_s3, %s769_s26  ;;  %p773_p10 = scmp.lt.u32.totalorder %s769_s26, %s1209_s3 }
  0x6e   :  { %p775_p11 = pnand %p773_p10, %p770_p9 }
  0x70   :  { %778 = shalt.err (!%p775_p11)
}
  0x71   :  { %582 = dma.vmem_to_hbm [thread:$0]  %s580_s1, 64, %s1209_s3, [#allocation5]   ;;  %v476_v60 = vadd.f32 %v475_v54, %v474_v41  ;;  %v521_v61 = vrot.slane %v520_v28, 2  ;;  %v532_v62 = vadd.f32 %v531_v5, %v266_v15  ;;  %v662_v63 = vpop.eup %661  ;;  %v472_v1 = vadd.f32 %v471_v55, %v470_v16 }
  0x72   :  { %v482_v2 = vadd.f32 %v481_v56, %v480_v18  ;;  %v527_v4 = vrot.slane %v526_v57, 2  ;;  %v538_v10 = vadd.f32 %v537_v6, %v267_v51  ;;  %v664_v12 = vpop.eup %663  ;;  %v137_v14 = vmul.f32 0.6931472, %v662_v63  ;;  %s862_s3 = smov [#allocation13]  }
  0x73   :  { %v477_v13 = vrot.slane %v476_v60, 1  ;;  %v522_v22 = vadd.f32 %v521_v61, %v520_v28  ;;  %v533_v23 = vrot.slane %v532_v62, 2  ;;  %v666_v3 = vpop.eup %665  ;;  %v489_v20 = vcombine.low %v466_v19, %v472_v1  ;;  %s609_s11 = sshll.u32 %s862_s3, 4  ;;  %s610_s11 = int_to_ptr.vmem [resolvable:$true] %s609_s11 }
  0x74   :  { %v483_v17 = vrot.slane %v482_v2, 1  ;;  %v139_v27 = vmul.f32 0.6931472, %v664_v12  ;;  %v528_v35 = vadd.f32 %v527_v4, %v526_v57  ;;  %v668_v30 = vpop.eup %667  ;;  %v141_v31 = vmul.f32 0.6931472, %v666_v3  ;;  %s779_s0 = scalar_lea.vmem %s610_s11, 64  ;;  %p784_p13 = scmp.lt.s32.totalorder %s610_s11, %s610_s11 }
  0x75   :  { %v478_v7 = vadd.f32 %v477_v13, %v476_v60  ;;  %v144_v25 = vmax.f32 %v137_v14, -100.0  ;;  %v523_v32 = vrot.slane %v522_v22, 1  ;;  %v497_v24 = vrot.slane %v489_v20, %v951_v9  ;;  %p780_p12 = scmp.ne.s32.totalorder %s610_s11, %s779_s0  ;;  %p785_p0 = scmp.lt.s32.totalorder %s779_s0, %s779_s0 }
  0x76   :  { %v484_v37 = vadd.f32 %v483_v17, %v482_v2  ;;  %v143_v38 = vmul.f32 0.6931472, %v668_v30  ;;  %v145_v8 = vmax.f32 %v139_v27, -100.0  ;;  %v146_v29 = vmax.f32 %v141_v31, -100.0 }
  0x77   :  { %v148_v33 = vsub.f32 0.0, %v144_v25  ;;  %v524_v39 = vadd.f32 %v523_v32, %v522_v22  ;;  %v529_v40 = vrot.slane %v528_v35, 1  ;;  %v534_v45 = vadd.f32 %v533_v23, %v532_v62  ;;  %p786_p1 = por %p785_p0, %p784_p13 }
  0x78   :  { %v490_v36 = vcombine.low %v478_v7, %v484_v37  ;;  %v147_v42 = vmax.f32 %v143_v38, -100.0  ;;  %v149_v43 = vsub.f32 0.0, %v145_v8  ;;  %v150_v46 = vsub.f32 0.0, %v146_v29 }
  0x79   :  { %v230_v34 = vmul.f32 %v148_v33, %v1093_v59  ;;  %v530_v47 = vadd.f32 %v529_v40, %v528_v35  ;;  %v539_v11 = vrot.slane %v538_v10, 2  ;;  %v535_v15 = vrot.slane %v534_v45, 1  ;;  %p787_p2 = pnand %p786_p1, %p780_p12 }
  0x7a   :  { %v504_v44 = vrot.slane %v490_v36, %v951_v9  ;;  %v151_v48 = vsub.f32 0.0, %v147_v42  ;;  %v231_v49 = vmul.f32 %v149_v43, %v1101_v0  ;;  %v232_v41 = vmul.f32 %v150_v46, %v1119_v21 }
  0x7b   :  { %v403_v58 = vrot.slane %v230_v34, 4  ;;  %v540_v51 = vadd.f32 %v539_v11, %v538_v10  ;;  %v547_v53 = vcombine.low %v524_v39, %v530_v47  ;;  %v536_v28 = vadd.f32 %v535_v15, %v534_v45 }
  0x7c   :  { %v505_v52 = vcombine.low %v497_v24, %v504_v44  ;;  %v233_v16 = vmul.f32 %v151_v48, %v1123_v26  ;;  %v409_v18 = vrot.slane %v231_v49, 4  ;;  %v415_v54 = vrot.slane %v232_v41, 4 }
  0x7d   :  { %v404_v59 = vadd.f32 %v403_v58, %v230_v34  ;;  %v541_v5 = vrot.slane %v540_v51, 1  ;;  %v555_v63 = vrot.slane %v547_v53, %v951_v9 }
  0x7e   :  { %v512_v6 = vrot.slane %v505_v52, %v951_v9  ;;  %v410_v19 = vadd.f32 %v409_v18, %v231_v49  ;;  %v421_v0 = vrot.slane %v233_v16, 4  ;;  %v416_v21 = vadd.f32 %v415_v54, %v232_v41 }
  0x7f   :  { %v405_v55 = vrot.slane %v404_v59, 2  ;;  %v542_v56 = vadd.f32 %v541_v5, %v540_v51 }
  0x80   :  { %514 = vst.msk [vmem:[#allocation13] sm:$0xf] %vm1008_vm12, %v512_v6  ;;  %v411_v57 = vrot.slane %v410_v19, 2  ;;  %v422_v60 = vadd.f32 %v421_v0, %v233_v16  ;;  %v417_v61 = vrot.slane %v416_v21, 2 }
  0x81   :  { %v406_v26 = vadd.f32 %v405_v55, %v404_v59  ;;  %v548_v62 = vcombine.low %v536_v28, %v542_v56 }
  0x82   :  { %790 = shalt.err (!%p787_p2)
}
  0x83   :  { %s791_s12 = scalar_lea.hbm %s1212_s6, 64 }
  0x84   :  { %p792_p3 = scmp.ne.s32.totalorder %s1212_s6, %s791_s12  ;;  %p795_p4 = scmp.lt.u32.totalorder %s791_s12, %s1212_s6 }
  0x86   :  { %p797_p5 = pnand %p795_p4, %p792_p3 }
  0x88   :  { %800 = shalt.err (!%p797_p5)
}
  0x89   :  { %612 = dma.vmem_to_hbm [thread:$0]  %s610_s11, 64, %s1212_s6, [#allocation14]   ;;  %v412_v1 = vadd.f32 %v411_v57, %v410_v19  ;;  %v423_v2 = vrot.slane %v422_v60, 2  ;;  %v407_v4 = vrot.slane %v406_v26, 1  ;;  %v418_v10 = vadd.f32 %v417_v61, %v416_v21 }
  0x8a   :  { %v562_v12 = vrot.slane %v548_v62, %v951_v9  ;;  %s863_s19 = smov [#allocation15]  }
  0x8b   :  { %v413_v13 = vrot.slane %v412_v1, 1  ;;  %v424_v14 = vadd.f32 %v423_v2, %v422_v60  ;;  %s619_s20 = sshll.u32 %s863_s19, 4  ;;  %v408_v22 = vadd.f32 %v407_v4, %v406_v26  ;;  %v419_v23 = vrot.slane %v418_v10, 1  ;;  %s620_s20 = int_to_ptr.vmem [resolvable:$true] %s619_s20 }
  0x8c   :  { %v563_v3 = vcombine.low %v555_v63, %v562_v12  ;;  %s801_s6 = scalar_lea.vmem %s620_s20, 64  ;;  %p806_p7 = scmp.lt.s32.totalorder %s620_s20, %s620_s20 }
  0x8d   :  { %v414_v17 = vadd.f32 %v413_v13, %v412_v1  ;;  %v425_v20 = vrot.slane %v424_v14, 1  ;;  %v420_v27 = vadd.f32 %v419_v23, %v418_v10  ;;  %p802_p6 = scmp.ne.s32.totalorder %s620_s20, %s801_s6  ;;  %p807_p8 = scmp.lt.s32.totalorder %s801_s6, %s801_s6 }
  0x8e   :  { %v570_v35 = vrot.slane %v563_v3, %v951_v9 }
  0x8f   :  { %v426_v30 = vadd.f32 %v425_v20, %v424_v14  ;;  %v431_v7 = vcombine.low %v408_v22, %v414_v17  ;;  %p808_p9 = por %p807_p8, %p806_p7 }
  0x90   :  { %572 = vst.msk [vmem:[#allocation15] sm:$0xf] %vm1008_vm12, %v570_v35 }
  0x91   :  { %v432_v31 = vcombine.low %v420_v27, %v426_v30  ;;  %v439_v25 = vrot.slane %v431_v7, %v951_v9  ;;  %p809_p10 = pnand %p808_p9, %p802_p6 }
  0x93   :  { %812 = shalt.err (!%p809_p10)
}
  0x94   :  { %s813_s4 = scalar_lea.hbm %s1213_s7, 64 }
  0x95   :  { %p814_p11 = scmp.ne.s32.totalorder %s1213_s7, %s813_s4  ;;  %p817_p12 = scmp.lt.u32.totalorder %s813_s4, %s1213_s7 }
  0x97   :  { %p819_p13 = pnand %p817_p12, %p814_p11 }
  0x99   :  { %822 = shalt.err (!%p819_p13)
}
  0x9a   :  { %622 = dma.vmem_to_hbm [thread:$0]  %s620_s20, 64, %s1213_s7, [#allocation14]   ;;  %v446_v32 = vrot.slane %v432_v31, %v951_v9 }
  0x9b   :  { %s864_s29 = smov [#allocation12]  }
  0x9c   :  { %s599_s30 = sshll.u32 %s864_s29, 4  ;;  %v447_v37 = vcombine.low %v439_v25, %v446_v32  ;;  %s600_s30 = int_to_ptr.vmem [resolvable:$true] %s599_s30 }
  0x9d   :  { %s823_s8 = scalar_lea.vmem %s600_s30, 64  ;;  %p828_p1 = scmp.lt.s32.totalorder %s600_s30, %s600_s30 }
  0x9e   :  { %v454_v24 = vrot.slane %v447_v37, %v951_v9  ;;  %p824_p0 = scmp.ne.s32.totalorder %s600_s30, %s823_s8  ;;  %p829_p2 = scmp.lt.s32.totalorder %s823_s8, %s823_s8 }
  0xa0   :  { %456 = vst.msk [vmem:[#allocation12] sm:$0xf] %vm1008_vm12, %v454_v24  ;;  %p830_p3 = por %p829_p2, %p828_p1 }
  0xa2   :  { %p831_p4 = pnand %p830_p3, %p824_p0 }
  0xa4   :  { %834 = shalt.err (!%p831_p4)
}
  0xa5   :  { %s835_s10 = scalar_lea.hbm %s1211_s5, 64 }
  0xa6   :  { %p836_p5 = scmp.ne.s32.totalorder %s1211_s5, %s835_s10  ;;  %p839_p6 = scmp.lt.u32.totalorder %s835_s10, %s1211_s5 }
  0xa8   :  { %p841_p7 = pnand %p839_p6, %p836_p5 }
  0xaa   :  { %844 = shalt.err (!%p841_p7)
}
  0xab   :  { %602 = dma.vmem_to_hbm [thread:$0]  %s600_s30, 64, %s1211_s5, [#allocation11]  }
  0xac   :  { %849 = dma.done.wait [#allocation5], 64  }
  0xad   :  { %850 = vsyncadd [#allocation5], 4294967232 }
  0xae   :  { %851 = dma.done.wait [#allocation11], 128  }
  0xaf   :  { %852 = vsyncadd [#allocation11], 4294967168 }
  0xb0   :  { %853 = dma.done.wait [#allocation14], 128  }
  0xb1   :  { %854 = vsyncadd [#allocation14], 4294967168 }
  0xb2   :  { %638 = vsyncpa [#allocation4], 1 }
  0xb3   :  { %639 = vsyncpa [#allocation7], 1 }
  0xb4   :  { %640 = vsyncpa [#allocation5], 1 }
  0xb5   :  { %641 = vsyncpa [#allocation11], 1 }
  0xb6   :  { %642 = vsyncpa [#allocation14], 1 }

</bundles_post_ra>
